<compile_context>
chip_gen: v7x
topology: tpu7x:2x2x1
jax: 0.10.0
libtpu: 0.0.40
codegen_flags: <defaults>
</compile_context>

<pallas_src>
import functools

import jax
import jax.numpy as jnp
from jax.experimental import pallas as pl
from jax.experimental.pallas import tpu as pltpu


def _label_smoothing_kernel(pred_ref, tgt_ref, out_ref, *,
                            confidence, smooth_val, num_classes, total_rows):
    i = pl.program_id(0)

    pred = pred_ref[...].astype(jnp.float32)            # (bm, c_pad)
    bm, c_pad = pred.shape
    tgt = tgt_ref[...]                                   # (bm, 1) int32

    col = jax.lax.broadcasted_iota(jnp.int32, pred.shape, 1)

    # Static branch: only mask class columns if C was padded to a 128 multiple.
    if c_pad != num_classes:
        col_valid = col < num_classes
        pred = jnp.where(col_valid, pred, -jnp.inf)      # padded cols ignored

    m = jnp.max(pred, axis=-1, keepdims=True)            # (bm, 1)
    shifted = pred - m
    lse = jnp.log(jnp.sum(jnp.exp(shifted), axis=-1, keepdims=True))  # (bm, 1)

    if c_pad != num_classes:
        shifted_for_sum = jnp.where(col_valid, shifted, 0.0)
    else:
        shifted_for_sum = shifted
    sum_shifted = jnp.sum(shifted_for_sum, axis=-1, keepdims=True)    # (bm, 1)

    onehot = col == tgt                                  # (bm, c_pad)
    shifted_tgt = jnp.sum(jnp.where(onehot, shifted, 0.0),
                          axis=-1, keepdims=True)        # (bm, 1)

    # sum(true_dist) == 1  =>  loss = lse - smooth*sum(shifted)
    #                                 - (confidence - smooth)*shifted[target]
    per_row = (lse
               - jnp.float32(smooth_val) * sum_shifted
               - jnp.float32(confidence - smooth_val) * shifted_tgt)  # (bm, 1)

    # Ragged-tail mask: zero out rows past the true batch size.
    row = i * bm + jax.lax.broadcasted_iota(jnp.int32, per_row.shape, 0)
    per_row = jnp.where(row < total_rows, per_row, 0.0)

    out_ref[...] = per_row


def label_smoothing_loss(pred, target, *, smoothing=0.2, block_rows=None,
                         vmem_limit_bytes=None):
    """pred: (N, C) float (f32 or bf16), target: (N,) int. Returns scalar f32."""
    N, C = pred.shape
    confidence = 1.0 - smoothing
    smooth_val = smoothing / (C - 1) if C > 1 else 0.0   # guard C==1 edge case

    # Lane-dense class axis.
    c_pad = max(128, pl.cdiv(C, 128) * 128)
    itemsize = jnp.dtype(pred.dtype).itemsize

    if block_rows is None:
        # ~8 MiB per pred buffer (x2 double-buffering) — fits scoped VMEM on
        # v5e/v6e (128 MiB) and v7x (64 MiB) with plenty of headroom.
        budget = 8 * 1024 * 1024
        br = max(8, min(1024, budget // (c_pad * itemsize)))
        br = (br // 8) * 8
        block_rows = max(8, min(br, pl.cdiv(N, 8) * 8))
    assert block_rows % 8 == 0

    n_pad = pl.cdiv(N, block_rows) * block_rows
    grid = (n_pad // block_rows,)

    if (n_pad, c_pad) != (N, C):
        pred_p = jnp.zeros((n_pad, c_pad), pred.dtype).at[:N, :C].set(pred)
    else:
        pred_p = pred
    tgt_p = jnp.zeros((n_pad, 1), jnp.int32).at[:N, 0].set(target.astype(jnp.int32))

    if vmem_limit_bytes is None:
        tile_bytes = block_rows * c_pad * itemsize
        # Cover double-buffered input + output + headroom; explicit so v5e's
        # small default scoped-VMEM limit doesn't constrain the pipeline.
        vmem_limit_bytes = int(min(100 << 20,
                                   max(32 << 20, 3 * tile_bytes + (2 << 20))))

    kernel = functools.partial(
        _label_smoothing_kernel,
        confidence=float(confidence),
        smooth_val=float(smooth_val),
        num_classes=C,
        total_rows=N,
    )

    per_row = pl.pallas_call(
        kernel,
        out_shape=jax.ShapeDtypeStruct((n_pad, 1), jnp.float32),
        grid_spec=pltpu.PrefetchScalarGridSpec(
            num_scalar_prefetch=0,
            grid=grid,
            in_specs=[
                pl.BlockSpec((block_rows, c_pad), lambda i: (i, 0)),
                pl.BlockSpec((block_rows, 1), lambda i: (i, 0)),
            ],
            out_specs=pl.BlockSpec((block_rows, 1), lambda i: (i, 0)),
        ),
        compiler_params=pltpu.CompilerParams(
            dimension_semantics=("parallel",),   # no carry => both TCs on v7x
            vmem_limit_bytes=vmem_limit_bytes,
        ),
    )(pred_p, tgt_p)

    return jnp.sum(per_row) / jnp.float32(N)


def _reference(pred, target, smoothing=0.2):
    # Pure-JAX reference mirroring the PyTorch module.
    C = pred.shape[-1]
    confidence = 1.0 - smoothing
    logp = jax.nn.log_softmax(pred.astype(jnp.float32), axis=-1)
    true_dist = jnp.full_like(logp, smoothing / (C - 1))
    onehot = jax.nn.one_hot(target, C, dtype=jnp.bool_)
    true_dist = jnp.where(onehot, confidence, true_dist)
    return jnp.mean(jnp.sum(-true_dist * logp, axis=-1))


if __name__ == "__main__":
    key = jax.random.PRNGKey(0)
    k1, k2, k3, k4 = jax.random.split(key, 4)
    smoothing = 0.2

    # Case 1: small ragged shapes (exercise row padding + class-axis padding).
    N1, C1 = 10, 40
    pred1 = jax.random.normal(k1, (N1, C1), dtype=jnp.float32)
    tgt1 = jax.random.randint(k2, (N1,), 0, C1, dtype=jnp.int32)
    loss1 = jax.block_until_ready(label_smoothing_loss(pred1, tgt1,
                                                       smoothing=smoothing))
    ref1 = _reference(pred1, tgt1, smoothing=smoothing)
    assert jnp.allclose(loss1, ref1, atol=1e-5, rtol=1e-5), (loss1, ref1)

    # Case 2: bf16 input (halved HBM traffic path; kernel upcasts to f32).
    N2, C2 = 16, 256
    pred2 = jax.random.normal(k3, (N2, C2), dtype=jnp.float32).astype(jnp.bfloat16)
    tgt2 = jax.random.randint(k4, (N2,), 0, C2, dtype=jnp.int32)
    loss2 = jax.block_until_ready(label_smoothing_loss(pred2, tgt2,
                                                       smoothing=smoothing))
    ref2 = _reference(pred2, tgt2, smoothing=smoothing)
    assert jnp.allclose(loss2, ref2, atol=2e-4, rtol=2e-4), (loss2, ref2)

    print("KERNEL_OK")
</pallas_src>

<mosaic_0001>
module attributes {stable_mosaic.version = 11 : i64} {
  func.func @_label_smoothing_kernel(%arg0: i32, %arg1: memref<16x128xf32, #tpu.memory_space<vmem>>, %arg2: memref<16x1xi32, #tpu.memory_space<vmem>>, %arg3: memref<16x1xf32, #tpu.memory_space<vmem>>) attributes {dimension_semantics = [#tpu.dimension_semantics<parallel>], iteration_bounds = array<i64: 1>, scalar_prefetch = 0 : i64, scratch_operands = 0 : i64, tpu.core_type = #tpu.core_type<tc>, window_params = [{transform_indices = @transform_0, window_bounds = array<i64: 16, 128>}, {transform_indices = @transform_1, window_bounds = array<i64: 16, 1>}, {transform_indices = @transform_2, window_bounds = array<i64: 16, 1>}]} {
    %c0 = arith.constant 0 : index
    %c0_0 = arith.constant 0 : index
    %0 = vector.load %arg1[%c0, %c0_0] : memref<16x128xf32, #tpu.memory_space<vmem>>, vector<16x128xf32>
    %c0_1 = arith.constant 0 : index
    %c0_2 = arith.constant 0 : index
    %1 = vector.load %arg2[%c0_1, %c0_2] : memref<16x1xi32, #tpu.memory_space<vmem>>, vector<16x1xi32>
    %2 = tpu.iota {dimensions = array<i32: 1>} : vector<16x128xi32>
    %c40_i32 = arith.constant 40 : i32
    %3 = vector.broadcast %c40_i32 : i32 to vector<16x128xi32>
    %4 = arith.cmpi slt, %2, %3 : vector<16x128xi32>
    %cst = arith.constant 0xFF800000 : f32
    %5 = vector.broadcast %cst : f32 to vector<16x128xf32>
    %6 = arith.select %4, %0, %5 : vector<16x128xi1>, vector<16x128xf32>
    %cst_3 = arith.constant dense<0xFF800000> : vector<16xf32>
    %7 = vector.multi_reduction <maximumf>, %6, %cst_3 [1] : vector<16x128xf32> to vector<16xf32>
    %8 = vector.shape_cast %7 : vector<16xf32> to vector<16x1xf32>
    %9 = vector.broadcast %8 : vector<16x1xf32> to vector<16x128xf32>
    %10 = arith.subf %6, %9 : vector<16x128xf32>
    %11 = math.exp %10 : vector<16x128xf32>
    %cst_4 = arith.constant dense<0.000000e+00> : vector<16xf32>
    %12 = vector.multi_reduction <add>, %11, %cst_4 [1] : vector<16x128xf32> to vector<16xf32>
    %13 = vector.shape_cast %12 : vector<16xf32> to vector<16x1xf32>
    %14 = math.log %13 : vector<16x1xf32>
    %cst_5 = arith.constant 0.000000e+00 : f32
    %15 = vector.broadcast %cst_5 : f32 to vector<16x128xf32>
    %16 = arith.select %4, %10, %15 : vector<16x128xi1>, vector<16x128xf32>
    %cst_6 = arith.constant dense<0.000000e+00> : vector<16xf32>
    %17 = vector.multi_reduction <add>, %16, %cst_6 [1] : vector<16x128xf32> to vector<16xf32>
    %18 = vector.shape_cast %17 : vector<16xf32> to vector<16x1xf32>
    %19 = vector.broadcast %1 : vector<16x1xi32> to vector<16x128xi32>
    %20 = arith.cmpi eq, %2, %19 : vector<16x128xi32>
    %cst_7 = arith.constant 0.000000e+00 : f32
    %21 = vector.broadcast %cst_7 : f32 to vector<16x128xf32>
    %22 = arith.select %20, %10, %21 : vector<16x128xi1>, vector<16x128xf32>
    %cst_8 = arith.constant dense<0.000000e+00> : vector<16xf32>
    %23 = vector.multi_reduction <add>, %22, %cst_8 [1] : vector<16x128xf32> to vector<16xf32>
    %24 = vector.shape_cast %23 : vector<16xf32> to vector<16x1xf32>
    %cst_9 = arith.constant 0.00512820529 : f32
    %25 = vector.broadcast %cst_9 : f32 to vector<16x1xf32>
    %26 = arith.mulf %25, %18 : vector<16x1xf32>
    %27 = arith.subf %14, %26 : vector<16x1xf32>
    %cst_10 = arith.constant 0.794871807 : f32
    %28 = vector.broadcast %cst_10 : f32 to vector<16x1xf32>
    %29 = arith.mulf %28, %24 : vector<16x1xf32>
    %30 = arith.subf %27, %29 : vector<16x1xf32>
    %c16_i32 = arith.constant 16 : i32
    %31 = arith.muli %arg0, %c16_i32 : i32
    %32 = tpu.iota {dimensions = array<i32: 0>} : vector<16x1xi32>
    %33 = vector.broadcast %31 : i32 to vector<16x1xi32>
    %34 = arith.addi %33, %32 : vector<16x1xi32>
    %c10_i32 = arith.constant 10 : i32
    %35 = vector.broadcast %c10_i32 : i32 to vector<16x1xi32>
    %36 = arith.cmpi slt, %34, %35 : vector<16x1xi32>
    %cst_11 = arith.constant 0.000000e+00 : f32
    %37 = vector.broadcast %cst_11 : f32 to vector<16x1xf32>
    %38 = arith.select %36, %30, %37 : vector<16x1xi1>, vector<16x1xf32>
    %c0_12 = arith.constant 0 : index
    %c0_13 = arith.constant 0 : index
    %39 = vector.load %arg3[%c0_12, %c0_13] : memref<16x1xf32, #tpu.memory_space<vmem>>, vector<16x1xf32>
    tpu.vector_store %arg3[%c0_12, %c0_13], %38 {strides = array<i32>} : memref<16x1xf32, #tpu.memory_space<vmem>>, vector<16x1xf32>,
    return
  }
  func.func @transform_0(%arg0: i32) -> (i32, i32) {
    %c0_i32 = arith.constant 0 : i32
    %c0_i32_0 = arith.constant 0 : i32
    return %arg0, %c0_i32 : i32, i32
  }
  func.func @transform_1(%arg0: i32) -> (i32, i32) {
    %c0_i32 = arith.constant 0 : i32
    %c0_i32_0 = arith.constant 0 : i32
    return %arg0, %c0_i32 : i32, i32
  }
  func.func @transform_2(%arg0: i32) -> (i32, i32) {
    %c0_i32 = arith.constant 0 : i32
    %c0_i32_0 = arith.constant 0 : i32
    return %arg0, %c0_i32 : i32, i32
  }
}

</mosaic_0001>

<bundles_post_ra>
// kernel: tpu_custom_call.1
= control target key start
LH: loop header
LB: loop body
LE: loop exit
PB: predicated region body
PF: predicated region fallthrough
CT: control target
= control target key end

     0   :  { %v15_v0 = vlaneseq  ;;  %v95_v1 = vmov 0   ;;  %vm77_vm4 = vcmask 7168   ;;  %s133_s0 = inlined_call_operand.vmem [shape: f32[16,128], index: 0, kind: input, shape index: {}]   ;;  %s134_s1 = inlined_call_operand.vmem [shape: s32[16,1], index: 1, kind: input, shape index: {}]   ;;  %s135_s2 = inlined_call_operand.vmem [shape: f32[16,1], index: 2, kind: output, shape index: {}]  }
   0x1   :  { %85 = vset.pattern.permute.xlu1 %v95_v1  ;;  %v14_v2 = vld [vmem:[%s134_s1 + $0x8] sm:$0xff]  ;;  %86 = vset.pattern.permute.xlu0 %v95_v1  ;;  %v13_v5 = vld [vmem:[%s134_s1] sm:$0xff] }
   0x2   :  { %v12_v3 = vld [vmem:[%s133_s0 + $0x8] sm:$0xff]  ;;  %v16_v4 = vand.u32 127, %v15_v0  ;;  %48 = vperm.xlu1 %85, %v14_v2   ;;  %v11_v6 = vld [vmem:[%s133_s0] sm:$0xff]  ;;  %v68_v26 = vshrl.u32 %v15_v0, 7 }
   0x4   :  { %vm17_vm0 = vcmp.lt.s32.totalorder %v16_v4, 40  ;;  %v69_v29 = vadd.s32 8, %v68_v26 }
   0x5   :  { %v19_v7 = vsel %vm17_vm0, %v12_v3, -inf  ;;  %v18_v8 = vsel %vm17_vm0, %v11_v6, -inf }
   0x6   :  { %22 = vmax.xlane.f32.xlu0 %v19_v7  ;;  %45 = vperm.xlu1 %85, %v13_v5   ;;  %vm74_vm3 = vcmp.lt.s32.totalorder %v69_v29, 10 }
   0xa   :  { %20 = vmax.xlane.f32.xlu0 %v18_v8 }
  0x81   :  { %v49_v17 = vpop.permute.xlu1 %48 }
  0x82   :  { %vm51_vm1 = vcmp.eq.s32.totalorder %v16_v4, %v49_v17 }
  0x85   :  { %v46_v20 = vpop.permute.xlu1 %45 }
  0x86   :  { %vm50_vm2 = vcmp.eq.s32.totalorder %v16_v4, %v46_v20 }
  0x93   :  { %v23_v9 = vpop.xlane.xlu0 %22 }
  0x94   :  { %v25_v10 = vsub.f32 %v19_v7, %v23_v9 }
  0x96   :  { %v28_v11 = vmul.f32 1.442695, %v25_v10  ;;  %v39_v18 = vsel %vm17_vm0, %v25_v10, 0.0  ;;  %v53_v21 = vsel %vm51_vm1, %v25_v10, 0.0 }
  0x97   :  { %v21_v12 = vpop.xlane.xlu0 %20 }
  0x98   :  { %87 = vpow2.f32 %v28_v11  ;;  %v24_v13 = vsub.f32 %v18_v8, %v21_v12 }
  0x9a   :  { %v26_v14 = vmul.f32 1.442695, %v24_v13  ;;  %v38_v19 = vsel %vm17_vm0, %v24_v13, 0.0  ;;  %v52_v22 = vsel %vm50_vm2, %v24_v13, 0.0 }
  0x9c   :  { %89 = vpow2.f32 %v26_v14 }
  0xa2   :  { %v88_v15 = vpop.eup %87 }
  0xa3   :  { %32 = vadd.xlane.f32.xlu0 %v88_v15 }
  0xa6   :  { %v90_v16 = vpop.eup %89 }
  0xa7   :  { %42 = vadd.xlane.f32.xlu0 %v39_v18  ;;  %30 = vadd.xlane.f32.xlu1 %v90_v16 }
  0xab   :  { %40 = vadd.xlane.f32.xlu0 %v38_v19 }
  0xaf   :  { %56 = vadd.xlane.f32.xlu0 %v53_v21 }
  0xb3   :  { %54 = vadd.xlane.f32.xlu0 %v52_v22 }
 0x130   :  { %v33_v23 = vpop.xlane.xlu0 %32 }
 0x131   :  { %91 = vlog2.f32 %v33_v23 }
 0x134   :  { %v31_v24 = vpop.xlane.xlu1 %30  ;;  %v43_v25 = vpop.xlane.xlu0 %42 }
 0x135   :  { %93 = vlog2.f32 %v31_v24  ;;  %v59_v31 = vmul.f32 0.0051282053, %v43_v25 }
 0x138   :  { %v41_v27 = vpop.xlane.xlu0 %40 }
 0x139   :  { %v58_v37 = vmul.f32 0.0051282053, %v41_v27 }
 0x13b   :  { %v92_v28 = vpop.eup %91 }
 0x13c   :  { %v37_v30 = vmul.f32 0.6931472, %v92_v28  ;;  %v57_v32 = vpop.xlane.xlu0 %56 }
 0x13d   :  { %v63_v33 = vmul.f32 0.7948718, %v57_v32 }
 0x13e   :  { %v61_v34 = vsub.f32 %v37_v30, %v59_v31 }
 0x13f   :  { %v94_v35 = vpop.eup %93 }
 0x140   :  { %v35_v36 = vmul.f32 0.6931472, %v94_v35  ;;  %v65_v38 = vsub.f32 %v61_v34, %v63_v33  ;;  %v55_v39 = vpop.xlane.xlu0 %54 }
 0x141   :  { %v62_v40 = vmul.f32 0.7948718, %v55_v39 }
 0x142   :  { %v60_v41 = vsub.f32 %v35_v36, %v58_v37  ;;  %v76_v42 = vsel %vm74_vm3, %v65_v38, 0.0 }
 0x143   :  { %79 = vst.msk [vmem:[%s135_s2 + $0x8] sm:$0xff] %vm77_vm4, %v76_v42 }
 0x144   :  { %v64_v43 = vsub.f32 %v60_v41, %v62_v40 }
 0x146   :  { %78 = vst.msk [vmem:[%s135_s2] sm:$0xff] %vm77_vm4, %v64_v43 }

</bundles_post_ra>
